<compile_context>
chip_gen: v6e
topology: v6e:2x2x1
jax: 0.10.0
libtpu: 0.0.40
codegen_flags: <defaults>
</compile_context>

<pallas_src>
import functools
import numbers

import jax
import jax.numpy as jnp
from jax.experimental import pallas as pl
from jax.experimental.pallas import tpu as pltpu


_TILE_BYTES_CAP = 2 << 20  # ~2 MiB of input per tile


def _softmax_axis1(x, scale, out_dtype):
    # NOTE: scale is applied BEFORE the max (max(s*x) != s*max(x) for s < 0).
    z = scale * x.astype(jnp.float32)
    z = z - jnp.max(z, axis=1, keepdims=True)          # stable: subtract channel max
    e = jnp.exp(z)
    denom = jnp.sum(e, axis=1, keepdims=True)
    return (e / denom).astype(out_dtype)                # exact divide (HBM-bound => free)


def _cwsm_kernel_static(x_ref, o_ref, *, scale):
    o_ref[...] = _softmax_axis1(x_ref[...], scale, o_ref.dtype)


def _cwsm_kernel_dynamic(scale_ref, x_ref, o_ref):
    o_ref[...] = _softmax_axis1(x_ref[...], scale_ref[0], o_ref.dtype)


def _divisors(n):
    return [d for d in range(1, n + 1) if n % d == 0]


def _num_tensorcores():
    """Best-effort TensorCore count (v7x: 2/chip, v5e/v6e: 1).  Falls back to 1
    (no forced grid splitting) if the query is unavailable (e.g. interpret mode)."""
    try:
        info = pltpu.get_tpu_info()
    except Exception:
        return 1
    for attr in ("num_cores", "core_count", "num_tensorcores"):
        v = getattr(info, attr, None)
        if v:
            return int(v)
    return 1


def _choose_tiles_4d(N, C, rows, itemsize):
    """Tiles for the lane-dense (N, C, rows, 128) layout."""
    cap_elems = max(_TILE_BYTES_CAP // itemsize, 1)
    # tile_rows: largest divisor of `rows` that is a multiple of 8 (f32 sublane) or
    # equals `rows` (full-dim blocks are always legal) and fits the ~2 MiB cap.
    cands = [r for r in _divisors(rows) if (r % 8 == 0 or r == rows)]
    fitting = [r for r in cands if C * r * 128 <= cap_elems]
    # TODO(synk): for huge C even the minimal legal tile can exceed the cap; an
    # online (chunked-over-C) softmax with running max/sum scratch is needed there.
    tile_rows = max(fitting) if fitting else min(cands)

    # Batch several N per step only when the whole spatial extent already fits in
    # one tile (amortizes the ~0.35 us per-step overhead on small images).
    tile_n = 1
    if tile_rows == rows:
        for tn in _divisors(N):
            if tn * C * rows * 128 <= cap_elems:
                tile_n = tn

    # Megacore (v7x only): keep several steps per TensorCore along the parallel
    # axes.  Never force-split on single-core v5e/v6e.
    cores = _num_tensorcores()
    if cores > 1:
        target = 2 * cores
        while (N // tile_n) * (rows // tile_rows) < target and tile_n > 1:
            tile_n = max(d for d in _divisors(N) if d < tile_n)
    return tile_n, tile_rows


def _choose_tile_n_3d(N, C, HW, itemsize):
    """Tile over N for the ragged-HW (N, C, HW) layout."""
    cap_elems = max(_TILE_BYTES_CAP // itemsize, 1)
    tile_n = 1
    for tn in _divisors(N):
        if tn * C * HW <= cap_elems:
            tile_n = tn
    cores = _num_tensorcores()
    if cores > 1:
        target = 2 * cores
        while (N // tile_n) < target and tile_n > 1:
            tile_n = max(d for d in _divisors(N) if d < tile_n)
    return tile_n


def channel_wise_softmax(x, dim=None, scaling=1.0):
    """Pallas TPU implementation of ChannelWiseSoftmax.forward.

    x: (N, C, H, W) array (NCHW, same as PyTorch).
    dim: accepted for API parity, ignored (reference always softmaxes over dim=1).
    scaling: scalar multiplier applied before the softmax.
    """
    del dim  # matches reference: F.softmax(scaling * input, dim=1) regardless of `dim`
    N, C, H, W = x.shape
    HW = H * W
    itemsize = jnp.dtype(x.dtype).itemsize

    # Static Python scaling -> closed-over constant; traced scaling -> SMEM scalar.
    if isinstance(scaling, numbers.Number):
        kernel = functools.partial(_cwsm_kernel_static, scale=float(scaling))
        scale_args, scale_specs = (), []
    else:
        kernel = _cwsm_kernel_dynamic
        scale_args = (jnp.asarray(scaling, jnp.float32).reshape(1),)
        scale_specs = [pl.BlockSpec(memory_space=pltpu.MemorySpace.SMEM)]

    if HW % 128 == 0:
        # Lane-dense path: metadata-only reshape to (N, C, HW/128, 128).  C is off
        # the (sublane, lane) layout axes, so the channel reduction is pure VPU.
        rows = HW // 128
        x4 = x.reshape(N, C, rows, 128)
        tile_n, tile_rows = _choose_tiles_4d(N, C, rows, itemsize)
        grid = (N // tile_n, rows // tile_rows)
        spec = pl.BlockSpec((tile_n, C, tile_rows, 128), lambda i, j: (i, 0, j, 0))
        out = pl.pallas_call(
            kernel,
            out_shape=jax.ShapeDtypeStruct((N, C, rows, 128), x.dtype),
            grid=grid,
            in_specs=scale_specs + [spec],
            out_specs=spec,
            compiler_params=pltpu.CompilerParams(
                dimension_semantics=("parallel", "parallel")),
        )(*scale_args, x4)
    else:
        # Ragged-HW path: block last dim == full HW (legal when it equals the array
        # dim); only the final vreg per row pays a masked store.  No host-side
        # pad/slice => no extra HBM round trips.  C sits on the sublane axis here
        # (XLU reduction) which is acceptable for the uncommon ragged case.
        x3 = x.reshape(N, C, HW)
        tile_n = _choose_tile_n_3d(N, C, HW, itemsize)
        grid = (N // tile_n,)
        spec = pl.BlockSpec((tile_n, C, HW), lambda i: (i, 0, 0))
        out = pl.pallas_call(
            kernel,
            out_shape=jax.ShapeDtypeStruct((N, C, HW), x.dtype),
            grid=grid,
            in_specs=scale_specs + [spec],
            out_specs=spec,
            compiler_params=pltpu.CompilerParams(
                dimension_semantics=("parallel",)),
        )(*scale_args, x3)

    return out.reshape(N, C, H, W)


if __name__ == "__main__":
    key = jax.random.PRNGKey(0)

    # --- main test: lane-aligned spatial extent (HW = 256) ---
    N, C, H, W = 2, 4, 16, 16
    x = jax.random.normal(key, (N, C, H, W), dtype=jnp.float32)
    scaling = 2.5
    y = jax.block_until_ready(channel_wise_softmax(x, dim=2, scaling=scaling))
    ref = jax.nn.softmax(scaling * x, axis=1)
    assert y.shape == (N, C, H, W)
    assert jnp.allclose(y, ref, atol=1e-5, rtol=1e-5), "mismatch vs reference softmax"
    assert jnp.allclose(jnp.sum(y, axis=1), jnp.ones((N, H, W)), atol=1e-5)

    # --- secondary test: ragged spatial extent (HW = 49) + negative scaling ---
    x2 = jax.random.normal(jax.random.PRNGKey(1), (2, 4, 7, 7), dtype=jnp.float32)
    y2 = jax.block_until_ready(channel_wise_softmax(x2, dim=0, scaling=-1.5))
    ref2 = jax.nn.softmax(-1.5 * x2, axis=1)
    assert jnp.allclose(y2, ref2, atol=1e-5, rtol=1e-5), "mismatch on ragged-HW path"

    print("KERNEL_OK")
</pallas_src>

<mosaic_0001>
module attributes {stable_mosaic.version = 11 : i64} {
  func.func @_cwsm_kernel_static(%arg0: i32, %arg1: i32, %arg2: memref<2x4x2x128xf32, #tpu.memory_space<vmem>>, %arg3: memref<2x4x2x128xf32, #tpu.memory_space<vmem>>) attributes {dimension_semantics = [#tpu.dimension_semantics<parallel>, #tpu.dimension_semantics<parallel>], iteration_bounds = array<i64: 1, 1>, scalar_prefetch = 0 : i64, scratch_operands = 0 : i64, tpu.core_type = #tpu.core_type<tc>, window_params = [{transform_indices = @transform_0, window_bounds = array<i64: 2, 4, 2, 128>}, {transform_indices = @transform_1, window_bounds = array<i64: 2, 4, 2, 128>}]} {
    %c0 = arith.constant 0 : index
    %c0_0 = arith.constant 0 : index
    %c0_1 = arith.constant 0 : index
    %c0_2 = arith.constant 0 : index
    %0 = vector.load %arg2[%c0, %c0_0, %c0_1, %c0_2] : memref<2x4x2x128xf32, #tpu.memory_space<vmem>>, vector<2x4x2x128xf32>
    %cst = arith.constant 2.500000e+00 : f32
    %1 = vector.broadcast %cst : f32 to vector<2x4x2x128xf32>
    %2 = arith.mulf %1, %0 : vector<2x4x2x128xf32>
    %cst_3 = arith.constant dense<0xFF800000> : vector<2x2x128xf32>
    %3 = vector.multi_reduction <maximumf>, %2, %cst_3 [1] : vector<2x4x2x128xf32> to vector<2x2x128xf32>
    %4 = vector.shape_cast %3 : vector<2x2x128xf32> to vector<2x1x2x128xf32>
    %5 = vector.broadcast %4 : vector<2x1x2x128xf32> to vector<2x4x2x128xf32>
    %6 = arith.subf %2, %5 : vector<2x4x2x128xf32>
    %7 = math.exp %6 : vector<2x4x2x128xf32>
    %cst_4 = arith.constant dense<0.000000e+00> : vector<2x2x128xf32>
    %8 = vector.multi_reduction <add>, %7, %cst_4 [1] : vector<2x4x2x128xf32> to vector<2x2x128xf32>
    %9 = vector.shape_cast %8 : vector<2x2x128xf32> to vector<2x1x2x128xf32>
    %10 = vector.broadcast %9 : vector<2x1x2x128xf32> to vector<2x4x2x128xf32>
    %11 = arith.divf %7, %10 : vector<2x4x2x128xf32>
    %c0_5 = arith.constant 0 : index
    %c0_6 = arith.constant 0 : index
    %c0_7 = arith.constant 0 : index
    %c0_8 = arith.constant 0 : index
    %12 = vector.load %arg3[%c0_5, %c0_6, %c0_7, %c0_8] : memref<2x4x2x128xf32, #tpu.memory_space<vmem>>, vector<2x4x2x128xf32>
    tpu.vector_store %arg3[%c0_5, %c0_6, %c0_7, %c0_8], %11 {strides = array<i32>} : memref<2x4x2x128xf32, #tpu.memory_space<vmem>>, vector<2x4x2x128xf32>,
    return
  }
  func.func @transform_0(%arg0: i32, %arg1: i32) -> (i32, i32, i32, i32) {
    %c0_i32 = arith.constant 0 : i32
    %c0_i32_0 = arith.constant 0 : i32
    %c0_i32_1 = arith.constant 0 : i32
    return %arg0, %c0_i32, %arg1, %c0_i32_0 : i32, i32, i32, i32
  }
  func.func @transform_1(%arg0: i32, %arg1: i32) -> (i32, i32, i32, i32) {
    %c0_i32 = arith.constant 0 : i32
    %c0_i32_0 = arith.constant 0 : i32
    %c0_i32_1 = arith.constant 0 : i32
    return %arg0, %c0_i32, %arg1, %c0_i32_0 : i32, i32, i32, i32
  }
}

</mosaic_0001>

<bundles_post_ra>
// kernel: tpu_custom_call.1
= control target key start
LH: loop header
LB: loop body
LE: loop exit
PB: predicated region body
PF: predicated region fallthrough
CT: control target
= control target key end

     0   :  { %6 = vsyncpa [#allocation3], 0  ;;  %s237_s0 = inlined_call_operand.hbm [shape: f32[2,4,2,128], index: 0, kind: input, shape index: {}]   ;;  %s238_s1 = inlined_call_operand.hbm [shape: f32[2,4,2,128], index: 1, kind: output, shape index: {}]  }
   0x1   :  { %7 = vsyncpa [#allocation4], 0  ;;  %s195_s6 = smov [#allocation2]  }
   0x2   :  { %s13_s7 = sshll.u32 %s195_s6, 4  ;;  %s14_s7 = int_to_ptr.vmem [resolvable:$true] %s13_s7 }
   0x3   :  { %s159_s8 = scalar_lea.vmem %s14_s7, 256  ;;  %p164_p1 = scmp.lt.s32.totalorder %s14_s7, %s14_s7 }
   0x4   :  { %p160_p0 = scmp.ne.s32.totalorder %s14_s7, %s159_s8  ;;  %p165_p2 = scmp.lt.s32.totalorder %s159_s8, %s159_s8 }
   0x6   :  { %p166_p3 = por %p165_p2, %p164_p1 }
   0x8   :  { %p167_p4 = pnand %p166_p3, %p160_p0 }
   0xa   :  { %170 = shalt.err (!%p167_p4)
}
   0xb   :  { %s196_s9 = smov 32   ;;  %s197_s10 = smov 2  }
   0xc   :  { %19 = dma.hbm_to_vmem [thread:$0]  %s237_s0, 256, %s14_s7, [#allocation3], %s196_s9, %s196_s9, %s197_s10  }
   0xd   :  { %191 = dma.done.wait [#allocation3], 256  }
   0xe   :  { %192 = vsyncadd [#allocation3], 4294967040  ;;  %vm39_vm0 = vcmask 1041408   ;;  %v23_v0 = vld [vmem:[#allocation2] sm:$0x3]  ;;  %s198_s0 = smov [#allocation5]  }
   0xf   :  { %v24_v1 = vld [vmem:[#allocation2 + $0x2] sm:$0x3]  ;;  %v25_v2 = vld [vmem:[#allocation2 + $0x4] sm:$0x3]  ;;  %v26_v3 = vld [vmem:[#allocation2 + $0x6] sm:$0x3] }
  0x10   :  { %v31_v4 = vmul.f32 2.5, %v23_v0  ;;  %v32_v5 = vmul.f32 2.5, %v24_v1  ;;  %v33_v6 = vmul.f32 2.5, %v25_v2  ;;  %v34_v7 = vmul.f32 2.5, %v26_v3  ;;  %v27_v8 = vld [vmem:[#allocation2 + $0x8] sm:$0x3] }
  0x11   :  { %v28_v9 = vld [vmem:[#allocation2 + $0xa] sm:$0x3]  ;;  %v29_v13 = vld [vmem:[#allocation2 + $0xc] sm:$0x3]  ;;  %v35_v14 = vmul.f32 2.5, %v27_v8  ;;  %s115_s13 = sshll.u32 %s198_s0, 4  ;;  %s116_s13 = int_to_ptr.vmem [resolvable:$true] %s115_s13 }
  0x12   :  { %v40_v10 = vsel %vm39_vm0, %v31_v4, -inf  ;;  %v41_v11 = vsel %vm39_vm0, %v32_v5, -inf  ;;  %v42_v12 = vsel %vm39_vm0, %v33_v6, -inf  ;;  %v44_v16 = vsel %vm39_vm0, %v34_v7, -inf  ;;  %v30_v17 = vld [vmem:[#allocation2 + $0xe] sm:$0x3]  ;;  %p176_p6 = scmp.lt.s32.totalorder %s116_s13, %s116_s13 }
  0x13   :  { %v43_v15 = vmax.f32 %v40_v10, %v42_v12  ;;  %v36_v18 = vmul.f32 2.5, %v28_v9  ;;  %v37_v19 = vmul.f32 2.5, %v29_v13  ;;  %v45_v20 = vmax.f32 %v41_v11, %v44_v16  ;;  %s171_s14 = scalar_lea.vmem %s116_s13, 256 }
  0x14   :  { %v38_v21 = vmul.f32 2.5, %v30_v17  ;;  %v47_v22 = vsel %vm39_vm0, %v35_v14, -inf  ;;  %p172_p5 = scmp.ne.s32.totalorder %s116_s13, %s171_s14  ;;  %p177_p7 = scmp.lt.s32.totalorder %s171_s14, %s171_s14 }
  0x15   :  { %v48_v23 = vsel %vm39_vm0, %v36_v18, -inf  ;;  %v49_v24 = vsel %vm39_vm0, %v37_v19, -inf  ;;  %v46_v25 = vmax.f32 %v43_v15, %v45_v20 }
  0x16   :  { %v50_v26 = vmax.f32 %v47_v22, %v49_v24  ;;  %v51_v27 = vsel %vm39_vm0, %v38_v21, -inf  ;;  %p178_p8 = por %p177_p7, %p176_p6 }
  0x17   :  { %v52_v28 = vmax.f32 %v48_v23, %v51_v27  ;;  %v54_v29 = vsub.f32 %v31_v4, %v46_v25  ;;  %v55_v30 = vsub.f32 %v32_v5, %v46_v25  ;;  %v56_v31 = vsub.f32 %v33_v6, %v46_v25 }
  0x18   :  { %v57_v32 = vsub.f32 %v34_v7, %v46_v25  ;;  %p179_p9 = pnand %p178_p8, %p172_p5 }
  0x19   :  { %v53_v33 = vmax.f32 %v50_v26, %v52_v28  ;;  %v62_v34 = vmul.f32 1.442695, %v54_v29  ;;  %v64_v35 = vmul.f32 1.442695, %v55_v30  ;;  %v66_v36 = vmul.f32 1.442695, %v56_v31 }
  0x1a   :  { %v68_v37 = vmul.f32 1.442695, %v57_v32 }
  0x1b   :  { %v58_v38 = vsub.f32 %v35_v14, %v53_v33  ;;  %v59_v39 = vsub.f32 %v36_v18, %v53_v33  ;;  %v60_v40 = vsub.f32 %v37_v19, %v53_v33  ;;  %131 = vpow2.f32 %v62_v34 }
  0x1c   :  { %v61_v41 = vsub.f32 %v38_v21, %v53_v33  ;;  %133 = vpow2.f32 %v64_v35 }
  0x1d   :  { %v70_v42 = vmul.f32 1.442695, %v58_v38  ;;  %v72_v43 = vmul.f32 1.442695, %v59_v39  ;;  %135 = vpow2.f32 %v66_v36  ;;  %v74_v44 = vmul.f32 1.442695, %v60_v40 }
  0x1e   :  { %137 = vpow2.f32 %v68_v37  ;;  %v76_v45 = vmul.f32 1.442695, %v61_v41 }
  0x1f   :  { %139 = vpow2.f32 %v70_v42 }
  0x20   :  { %141 = vpow2.f32 %v72_v43 }
  0x21   :  { %143 = vpow2.f32 %v74_v44 }
  0x22   :  { %145 = vpow2.f32 %v76_v45 }
  0x28   :  { %v132_v46 = vpop.eup %131 }
  0x29   :  { %v134_v47 = vpop.eup %133  ;;  %v78_v48 = vsel %vm39_vm0, %v132_v46, 0.0 }
  0x2a   :  { %v136_v49 = vpop.eup %135  ;;  %v79_v50 = vsel %vm39_vm0, %v134_v47, 0.0 }
  0x2b   :  { %v138_v51 = vpop.eup %137  ;;  %v80_v52 = vadd.f32 %v79_v50, %v78_v48  ;;  %v81_v53 = vsel %vm39_vm0, %v136_v49, 0.0 }
  0x2c   :  { %v140_v54 = vpop.eup %139  ;;  %v83_v55 = vsel %vm39_vm0, %v138_v51, 0.0 }
  0x2d   :  { %v142_v56 = vpop.eup %141  ;;  %v82_v57 = vadd.f32 %v81_v53, %v80_v52  ;;  %v85_v58 = vsel %vm39_vm0, %v140_v54, 0.0 }
  0x2e   :  { %v144_v59 = vpop.eup %143  ;;  %v86_v60 = vsel %vm39_vm0, %v142_v56, 0.0 }
  0x2f   :  { %v146_v61 = vpop.eup %145  ;;  %v84_v62 = vadd.f32 %v83_v55, %v82_v57  ;;  %v87_v63 = vadd.f32 %v86_v60, %v85_v58  ;;  %v88_v0 = vsel %vm39_vm0, %v144_v59, 0.0 }
  0x30   :  { %v90_v1 = vsel %vm39_vm0, %v146_v61, 0.0 }
  0x31   :  { %147 = vrcp.f32 %v84_v62  ;;  %v89_v2 = vadd.f32 %v88_v0, %v87_v63 }
  0x33   :  { %v91_v3 = vadd.f32 %v90_v1, %v89_v2 }
  0x35   :  { %149 = vrcp.f32 %v91_v3 }
  0x3e   :  { %v148_v4 = vpop.eup %147 }
  0x3f   :  { %v93_v5 = vmul.f32 %v148_v4, %v132_v46  ;;  %v94_v6 = vmul.f32 %v148_v4, %v134_v47  ;;  %v95_v7 = vmul.f32 %v148_v4, %v136_v49  ;;  %v96_v8 = vmul.f32 %v148_v4, %v138_v51 }
  0x41   :  { %102 = vst [vmem:[#allocation5] sm:$0x3] %v93_v5  ;;  %103 = vst [vmem:[#allocation5 + $0x2] sm:$0x3] %v94_v6 }
  0x42   :  { %104 = vst [vmem:[#allocation5 + $0x4] sm:$0x3] %v95_v7  ;;  %105 = vst [vmem:[#allocation5 + $0x6] sm:$0x3] %v96_v8  ;;  %v150_v9 = vpop.eup %149 }
  0x43   :  { %v98_v10 = vmul.f32 %v150_v9, %v140_v54  ;;  %v99_v11 = vmul.f32 %v150_v9, %v142_v56  ;;  %v100_v12 = vmul.f32 %v150_v9, %v144_v59  ;;  %v101_v13 = vmul.f32 %v150_v9, %v146_v61 }
  0x45   :  { %106 = vst [vmem:[#allocation5 + $0x8] sm:$0x3] %v98_v10  ;;  %107 = vst [vmem:[#allocation5 + $0xa] sm:$0x3] %v99_v11 }
  0x46   :  { %108 = vst [vmem:[#allocation5 + $0xc] sm:$0x3] %v100_v12  ;;  %109 = vst [vmem:[#allocation5 + $0xe] sm:$0x3] %v101_v13 }
  0x47   :  { %182 = shalt.err (!%p179_p9)
}
  0x48   :  { %121 = dma.vmem_to_hbm [thread:$0]  %s116_s13, 256, %s238_s1, [#allocation4], %s196_s9, %s196_s9, %s197_s10  }
  0x49   :  { %193 = dma.done.wait [#allocation4], 256  }
  0x4a   :  { %194 = vsyncadd [#allocation4], 4294967040 }
  0x4b   :  { %125 = vsyncpa [#allocation3], 1 }
  0x4c   :  { %126 = vsyncpa [#allocation4], 1 }

</bundles_post_ra>
